<compile_context>
chip_gen: v5e
topology: v5e:2x2
jax: 0.10.0
libtpu: 0.0.40
codegen_flags: <defaults>
</compile_context>

<pallas_src>
import functools
import math

import jax
import jax.numpy as jnp
from jax.experimental import pallas as pl
from jax.experimental.pallas import tpu as pltpu


# --------------------------------------------------------------------------
# Small tiling helpers
# --------------------------------------------------------------------------

def _round_up(x, m):
    return (x + m - 1) // m * m


def _tile(dim, desired):
    """Pick (tile, padded_dim).  If dim fits in one tile, use the full dim
    (exempt from (8,128) alignment); otherwise use `desired` (already a
    multiple of 8/128) and pad the dim up to a multiple of it."""
    if dim <= desired:
        return dim, dim
    return desired, _round_up(dim, desired)


def _pad_dim(x, axis, target):
    if x.shape[axis] == target:
        return x
    widths = [(0, 0)] * x.ndim
    widths[axis] = (0, target - x.shape[axis])
    return jnp.pad(x, widths)


_VMEM_LIMIT = 32 * 1024 * 1024  # safe on v5e/v6e/v7x, leaves headroom


def _gelu_tanh(y):
    c = math.sqrt(2.0 / math.pi)
    return 0.5 * y * (1.0 + jnp.tanh(c * (y + 0.044715 * y * y * y)))


def _layernorm_f32(x, g, b):
    mu = jnp.mean(x, axis=-1, keepdims=True)
    xc = x - mu
    var = jnp.mean(xc * xc, axis=-1, keepdims=True)
    return xc * jax.lax.rsqrt(var + 1e-5) * g + b


# --------------------------------------------------------------------------
# Fused LayerNorm + linear: y = act(LN(x) @ w + bias)
# LN(x) is computed once per row-tile (at j == 0) into a bf16 VMEM scratch
# and reused for every output column tile.  K (= H) is kept whole.
# --------------------------------------------------------------------------

def _ln_linear_kernel(x_ref, g_ref, b_ref, w_ref, bias_ref, o_ref, xn_ref,
                      *, activation):
    j = pl.program_id(1)

    @pl.when(j == 0)
    def _():
        x = x_ref[...].astype(jnp.float32)
        xn = _layernorm_f32(x, g_ref[...], b_ref[...])
        xn_ref[...] = xn.astype(xn_ref.dtype)

    y = jnp.dot(xn_ref[...], w_ref[...].astype(jnp.bfloat16),
                preferred_element_type=jnp.float32)
    y = y + bias_ref[...]
    if activation == "gelu":
        y = _gelu_tanh(y)
    o_ref[...] = y.astype(o_ref.dtype)


def ln_linear(x2d, gamma, beta, w, b, *, activation="none", tm=256, tn=256):
    M, K = x2d.shape
    Kw, N = w.shape
    assert K == Kw
    tm, Mp = _tile(M, tm)
    tn, Np = _tile(N, tn)

    xp = _pad_dim(x2d, 0, Mp)
    wp = _pad_dim(w, 1, Np)
    bp = _pad_dim(b.reshape(1, N).astype(jnp.float32), 1, Np)
    g = gamma.reshape(1, K).astype(jnp.float32)
    bt = beta.reshape(1, K).astype(jnp.float32)

    kernel = functools.partial(_ln_linear_kernel, activation=activation)
    out = pl.pallas_call(
        kernel,
        out_shape=jax.ShapeDtypeStruct((Mp, Np), x2d.dtype),
        grid=(Mp // tm, Np // tn),
        in_specs=[
            pl.BlockSpec((tm, K), lambda i, j: (i, 0)),
            pl.BlockSpec((1, K), lambda i, j: (0, 0)),
            pl.BlockSpec((1, K), lambda i, j: (0, 0)),
            pl.BlockSpec((K, tn), lambda i, j: (0, j)),
            pl.BlockSpec((1, tn), lambda i, j: (0, j)),
        ],
        out_specs=pl.BlockSpec((tm, tn), lambda i, j: (i, j)),
        scratch_shapes=[pltpu.VMEM((tm, K), jnp.bfloat16)],
        compiler_params=pltpu.CompilerParams(
            dimension_semantics=("parallel", "arbitrary"),
            vmem_limit_bytes=_VMEM_LIMIT),
    )(xp, g, bt, wp, bp)
    return out[:M, :N]


# --------------------------------------------------------------------------
# Fused ln_f + LM head: logits = LN(x) @ wte^T  (trans_b, no wte.T in HBM)
# --------------------------------------------------------------------------

def _ln_lm_head_kernel(x_ref, g_ref, b_ref, w_ref, o_ref, xn_ref):
    j = pl.program_id(1)

    @pl.when(j == 0)
    def _():
        x = x_ref[...].astype(jnp.float32)
        xn = _layernorm_f32(x, g_ref[...], b_ref[...])
        xn_ref[...] = xn.astype(xn_ref.dtype)

    o_ref[...] = jax.lax.dot_general(
        xn_ref[...], w_ref[...].astype(jnp.bfloat16),
        (((1,), (1,)), ((), ())),
        preferred_element_type=jnp.float32).astype(o_ref.dtype)


def ln_lm_head(x2d, gamma, beta, wte, *, tm=256, tn=512):
    M, K = x2d.shape
    V, Kw = wte.shape
    assert K == Kw
    tm, Mp = _tile(M, tm)
    tn, Vp = _tile(V, tn)

    xp = _pad_dim(x2d, 0, Mp)
    wp = _pad_dim(wte, 0, Vp)
    g = gamma.reshape(1, K).astype(jnp.float32)
    bt = beta.reshape(1, K).astype(jnp.float32)

    out = pl.pallas_call(
        _ln_lm_head_kernel,
        out_shape=jax.ShapeDtypeStruct((Mp, Vp), x2d.dtype),
        grid=(Mp // tm, Vp // tn),
        in_specs=[
            pl.BlockSpec((tm, K), lambda i, j: (i, 0)),
            pl.BlockSpec((1, K), lambda i, j: (0, 0)),
            pl.BlockSpec((1, K), lambda i, j: (0, 0)),
            pl.BlockSpec((tn, K), lambda i, j: (j, 0)),
        ],
        out_specs=pl.BlockSpec((tm, tn), lambda i, j: (i, j)),
        scratch_shapes=[pltpu.VMEM((tm, K), jnp.bfloat16)],
        compiler_params=pltpu.CompilerParams(
            dimension_semantics=("parallel", "arbitrary"),
            vmem_limit_bytes=_VMEM_LIMIT),
    )(xp, g, bt, wp)
    return out[:M, :V]


# --------------------------------------------------------------------------
# K-tiled linear with fused bias + residual add (output projections):
# y = x @ w + b + residual, fp32 accumulator, bf16 MXU operands.
# --------------------------------------------------------------------------

def _linear_residual_kernel(x_ref, w_ref, b_ref, r_ref, o_ref, acc_ref):
    k = pl.program_id(2)

    @pl.when(k == 0)
    def _():
        acc_ref[...] = jnp.zeros_like(acc_ref)

    acc_ref[...] += jnp.dot(
        x_ref[...].astype(jnp.bfloat16),
        w_ref[...].astype(jnp.bfloat16),
        preferred_element_type=jnp.float32)

    @pl.when(k == pl.num_programs(2) - 1)
    def _():
        o_ref[...] = (acc_ref[...] + b_ref[...] + r_ref[...]).astype(o_ref.dtype)


def linear_residual(x2d, w, b, residual, *, tm=256, tn=256, tk=512):
    M, K = x2d.shape
    Kw, N = w.shape
    assert K == Kw
    tm, Mp = _tile(M, tm)
    tn, Np = _tile(N, tn)
    tk, Kp = _tile(K, tk)

    xp = _pad_dim(_pad_dim(x2d, 0, Mp), 1, Kp)
    wp = _pad_dim(_pad_dim(w, 0, Kp), 1, Np)
    bp = _pad_dim(b.reshape(1, N).astype(jnp.float32), 1, Np)
    rp = _pad_dim(_pad_dim(residual, 0, Mp), 1, Np)

    out = pl.pallas_call(
        _linear_residual_kernel,
        out_shape=jax.ShapeDtypeStruct((Mp, Np), x2d.dtype),
        grid=(Mp // tm, Np // tn, Kp // tk),
        in_specs=[
            pl.BlockSpec((tm, tk), lambda i, j, k: (i, k)),
            pl.BlockSpec((tk, tn), lambda i, j, k: (k, j)),
            pl.BlockSpec((1, tn), lambda i, j, k: (0, j)),
            pl.BlockSpec((tm, tn), lambda i, j, k: (i, j)),
        ],
        out_specs=pl.BlockSpec((tm, tn), lambda i, j, k: (i, j)),
        scratch_shapes=[pltpu.VMEM((tm, tn), jnp.float32)],
        compiler_params=pltpu.CompilerParams(
            dimension_semantics=("parallel", "parallel", "arbitrary"),
            vmem_limit_bytes=_VMEM_LIMIT),
    )(xp, wp, bp, rp)
    return out[:M, :N]


# --------------------------------------------------------------------------
# Causal self-attention: one batch element (all heads) per grid step, no
# HBM transposes — qkv arrives in the layout the c_attn matmul produced.
# --------------------------------------------------------------------------

def _attn_kernel(qkv_ref, o_ref, *, n_head, scale):
    T = qkv_ref.shape[1]
    row = jax.lax.broadcasted_iota(jnp.int32, (T, T), 0)
    col = jax.lax.broadcasted_iota(jnp.int32, (T, T), 1)
    causal = col <= row

    for h in range(n_head):  # static unroll over heads
        q = qkv_ref[0, :, 0, h, :].astype(jnp.bfloat16)   # (T, hd)
        k = qkv_ref[0, :, 1, h, :].astype(jnp.bfloat16)   # (T, hd)
        v = qkv_ref[0, :, 2, h, :].astype(jnp.bfloat16)   # (T, hd)

        s = jax.lax.dot_general(
            q, k, (((1,), (1,)), ((), ())),
            preferred_element_type=jnp.float32) * scale    # (T, T)
        s = jnp.where(causal, s, -jnp.inf)
        s = s - jnp.max(s, axis=-1, keepdims=True)
        p = jnp.exp(s)
        p = p * pl.reciprocal(jnp.sum(p, axis=-1, keepdims=True), approx=True)

        out_h = jnp.dot(p.astype(jnp.bfloat16), v,
                        preferred_element_type=jnp.float32)  # (T, hd)
        o_ref[0, :, h, :] = out_h.astype(o_ref.dtype)


def causal_attention(qkv):
    # qkv: (B, T, 3, n_head, head_dim)
    B, T, three, nh, hd = qkv.shape
    assert three == 3
    scale = 1.0 / math.sqrt(hd)
    kernel = functools.partial(_attn_kernel, n_head=nh, scale=scale)
    return pl.pallas_call(
        kernel,
        out_shape=jax.ShapeDtypeStruct((B, T, nh, hd), qkv.dtype),
        grid=(B,),
        in_specs=[pl.BlockSpec((1, T, 3, nh, hd), lambda b: (b, 0, 0, 0, 0))],
        out_specs=pl.BlockSpec((1, T, nh, hd), lambda b: (b, 0, 0, 0)),
        compiler_params=pltpu.CompilerParams(
            dimension_semantics=("parallel",),
            vmem_limit_bytes=_VMEM_LIMIT),
    )(qkv)


# --------------------------------------------------------------------------
# Parameter init (matches GPT2._init_weights shapes / stds, deterministic)
# --------------------------------------------------------------------------

def init_params(key, vocab_size, max_len, hidden, n_head, n_layer):
    std = 0.02
    proj_std = 0.02 / math.sqrt(2 * n_layer)
    keys = jax.random.split(key, 2 + n_layer)
    params = {
        "wte": std * jax.random.normal(keys[0], (vocab_size, hidden), jnp.float32),
        "wpe": std * jax.random.normal(keys[1], (max_len, hidden), jnp.float32),
        "lnf_g": jnp.ones((hidden,), jnp.float32),
        "lnf_b": jnp.zeros((hidden,), jnp.float32),
        "blocks": [],
    }
    for l in range(n_layer):
        k = jax.random.split(keys[2 + l], 4)
        params["blocks"].append(dict(
            ln1_g=jnp.ones((hidden,), jnp.float32),
            ln1_b=jnp.zeros((hidden,), jnp.float32),
            w_attn=std * jax.random.normal(k[0], (hidden, 3 * hidden), jnp.float32),
            b_attn=jnp.zeros((3 * hidden,), jnp.float32),
            w_attn_proj=proj_std * jax.random.normal(k[1], (hidden, hidden), jnp.float32),
            b_attn_proj=jnp.zeros((hidden,), jnp.float32),
            ln2_g=jnp.ones((hidden,), jnp.float32),
            ln2_b=jnp.zeros((hidden,), jnp.float32),
            w_fc=std * jax.random.normal(k[2], (hidden, 4 * hidden), jnp.float32),
            b_fc=jnp.zeros((4 * hidden,), jnp.float32),
            w_mlp_proj=proj_std * jax.random.normal(k[3], (4 * hidden, hidden), jnp.float32),
            b_mlp_proj=jnp.zeros((hidden,), jnp.float32),
        ))
    return params


# --------------------------------------------------------------------------
# Forward pass (glue in plain JAX, hot paths in Pallas kernels above)
# --------------------------------------------------------------------------

def gpt2_forward(params, input_ids, n_head):
    B, T = input_ids.shape
    H = params["wte"].shape[1]
    hd = H // n_head

    tok_emb = jnp.take(params["wte"], input_ids, axis=0)       # (B, T, H)
    pos_emb = params["wpe"][:T]                                 # (T, H)
    x = (tok_emb + pos_emb[None, :, :]).reshape(B * T, H)       # dropout = identity

    for blk in params["blocks"]:
        # --- attention sub-block: fused LN -> c_attn, attn, c_proj + residual ---
        qkv = ln_linear(x, blk["ln1_g"], blk["ln1_b"],
                        blk["w_attn"], blk["b_attn"])           # (B*T, 3H)
        qkv = qkv.reshape(B, T, 3, n_head, hd)                  # free reshape
        att = causal_attention(qkv)                             # (B, T, nh, hd)
        att = att.reshape(B * T, H)                             # free reshape
        x = linear_residual(att, blk["w_attn_proj"], blk["b_attn_proj"], x)

        # --- MLP sub-block: fused LN -> c_fc (+gelu), c_proj + residual ---
        h = ln_linear(x, blk["ln2_g"], blk["ln2_b"],
                      blk["w_fc"], blk["b_fc"], activation="gelu")
        x = linear_residual(h, blk["w_mlp_proj"], blk["b_mlp_proj"], x)

    # weight tying: lm_head.weight == wte.weight  ->  logits = LN_f(x) @ wte^T
    logits = ln_lm_head(x, params["lnf_g"], params["lnf_b"], params["wte"])
    return logits.reshape(B, T, -1)


# --------------------------------------------------------------------------
# Main
# --------------------------------------------------------------------------

if __name__ == "__main__":
    vocab_size = 128
    max_len = 16
    hidden_size = 32
    num_attention_heads = 4
    num_hidden_layers = 2

    B, T = 2, 8

    key = jax.random.PRNGKey(0)
    pkey, ikey = jax.random.split(key)
    params = init_params(pkey, vocab_size, max_len, hidden_size,
                         num_attention_heads, num_hidden_layers)
    input_ids = jax.random.randint(ikey, (B, T), 0, vocab_size, dtype=jnp.int32)

    logits = gpt2_forward(params, input_ids, num_attention_heads)
    logits = jax.block_until_ready(logits)

    assert logits.shape == (B, T, vocab_size), logits.shape
    assert logits.dtype == jnp.float32
    assert bool(jnp.all(jnp.isfinite(logits)))
    print("KERNEL_OK")
</pallas_src>

<mosaic_0001>
module attributes {stable_mosaic.version = 11 : i64} {
  func.func @_ln_linear_kernel(%arg0: i32, %arg1: i32, %arg2: memref<16x32xf32, #tpu.memory_space<vmem>>, %arg3: memref<1x32xf32, #tpu.memory_space<vmem>>, %arg4: memref<1x32xf32, #tpu.memory_space<vmem>>, %arg5: memref<32x96xf32, #tpu.memory_space<vmem>>, %arg6: memref<1x96xf32, #tpu.memory_space<vmem>>, %arg7: memref<16x96xf32, #tpu.memory_space<vmem>>, %arg8: memref<16x32xbf16, #tpu.memory_space<vmem>>) attributes {dimension_semantics = [#tpu.dimension_semantics<parallel>, #tpu.dimension_semantics<arbitrary>], iteration_bounds = array<i64: 1, 1>, scalar_prefetch = 0 : i64, scratch_operands = 1 : i64, tpu.core_type = #tpu.core_type<tc>, window_params = [{transform_indices = @transform_0, window_bounds = array<i64: 16, 32>}, {pipeline_mode = #tpu.pipeline_mode<synchronous>, transform_indices = @transform_1, window_bounds = array<i64: 1, 32>}, {pipeline_mode = #tpu.pipeline_mode<synchronous>, transform_indices = @transform_2, window_bounds = array<i64: 1, 32>}, {transform_indices = @transform_3, window_bounds = array<i64: 32, 96>}, {transform_indices = @transform_4, window_bounds = array<i64: 1, 96>}, {transform_indices = @transform_5, window_bounds = array<i64: 16, 96>}]} {
    %c0_i32 = arith.constant 0 : i32
    %0 = arith.cmpi eq, %arg1, %c0_i32 : i32
    %1 = arith.extui %0 : i1 to i32
    %c0_i32_0 = arith.constant 0 : i32
    %2 = arith.cmpi ne, %1, %c0_i32_0 : i32
    scf.if %2 {
      %c0_8 = arith.constant 0 : index
      %c0_9 = arith.constant 0 : index
      %11 = vector.load %arg2[%c0_8, %c0_9] : memref<16x32xf32, #tpu.memory_space<vmem>>, vector<16x32xf32>
      %c0_10 = arith.constant 0 : index
      %c0_11 = arith.constant 0 : index
      %12 = vector.load %arg3[%c0_10, %c0_11] : memref<1x32xf32, #tpu.memory_space<vmem>>, vector<1x32xf32>
      %c0_12 = arith.constant 0 : index
      %c0_13 = arith.constant 0 : index
      %13 = vector.load %arg4[%c0_12, %c0_13] : memref<1x32xf32, #tpu.memory_space<vmem>>, vector<1x32xf32>
      %cst_14 = arith.constant dense<0.000000e+00> : vector<16xf32>
      %14 = vector.multi_reduction <add>, %11, %cst_14 [1] : vector<16x32xf32> to vector<16xf32>
      %15 = vector.shape_cast %14 : vector<16xf32> to vector<16x1xf32>
      %cst_15 = arith.constant 3.200000e+01 : f32
      %16 = vector.broadcast %cst_15 : f32 to vector<16x1xf32>
      %17 = arith.divf %15, %16 : vector<16x1xf32>
      %18 = vector.broadcast %17 : vector<16x1xf32> to vector<16x32xf32>
      %19 = arith.subf %11, %18 : vector<16x32xf32>
      %20 = arith.mulf %19, %19 : vector<16x32xf32>
      %cst_16 = arith.constant dense<0.000000e+00> : vector<16xf32>
      %21 = vector.multi_reduction <add>, %20, %cst_16 [1] : vector<16x32xf32> to vector<16xf32>
      %22 = vector.shape_cast %21 : vector<16xf32> to vector<16x1xf32>
      %cst_17 = arith.constant 3.200000e+01 : f32
      %23 = vector.broadcast %cst_17 : f32 to vector<16x1xf32>
      %24 = arith.divf %22, %23 : vector<16x1xf32>
      %cst_18 = arith.constant 9.99999974E-6 : f32
      %25 = vector.broadcast %cst_18 : f32 to vector<16x1xf32>
      %26 = arith.addf %24, %25 : vector<16x1xf32>
      %27 = math.rsqrt %26 : vector<16x1xf32>
      %28 = vector.broadcast %27 : vector<16x1xf32> to vector<16x32xf32>
      %29 = arith.mulf %19, %28 : vector<16x32xf32>
      %30 = vector.broadcast %12 : vector<1x32xf32> to vector<16x32xf32>
      %31 = arith.mulf %29, %30 : vector<16x32xf32>
      %32 = vector.broadcast %13 : vector<1x32xf32> to vector<16x32xf32>
      %33 = arith.addf %31, %32 : vector<16x32xf32>
      %34 = arith.truncf %33 : vector<16x32xf32> to vector<16x32xbf16>
      %c0_19 = arith.constant 0 : index
      %c0_20 = arith.constant 0 : index
      %35 = vector.load %arg8[%c0_19, %c0_20] : memref<16x32xbf16, #tpu.memory_space<vmem>>, vector<16x32xbf16>
      tpu.vector_store %arg8[%c0_19, %c0_20], %34 {strides = array<i32>} : memref<16x32xbf16, #tpu.memory_space<vmem>>, vector<16x32xbf16>,
    } else {
    }
    %c0 = arith.constant 0 : index
    %c0_1 = arith.constant 0 : index
    %3 = vector.load %arg8[%c0, %c0_1] : memref<16x32xbf16, #tpu.memory_space<vmem>>, vector<16x32xbf16>
    %c0_2 = arith.constant 0 : index
    %c0_3 = arith.constant 0 : index
    %4 = vector.load %arg5[%c0_2, %c0_3] : memref<32x96xf32, #tpu.memory_space<vmem>>, vector<32x96xf32>
    %5 = arith.truncf %4 : vector<32x96xf32> to vector<32x96xbf16>
    %cst = arith.constant dense<0.000000e+00> : vector<16x96xf32>
    %6 = tpu.matmul %3, %5, %cst {dimension_numbers = #tpu.dot_dimension_numbers<[1], [0], [0], [1], [0, 0, 1, 1], [], []>} : vector<16x32xbf16>, vector<32x96xbf16>, vector<16x96xf32> -> vector<16x96xf32>
    %c0_4 = arith.constant 0 : index
    %c0_5 = arith.constant 0 : index
    %7 = vector.load %arg6[%c0_4, %c0_5] : memref<1x96xf32, #tpu.memory_space<vmem>>, vector<1x96xf32>
    %8 = vector.broadcast %7 : vector<1x96xf32> to vector<16x96xf32>
    %9 = arith.addf %6, %8 : vector<16x96xf32>
    %c0_6 = arith.constant 0 : index
    %c0_7 = arith.constant 0 : index
    %10 = vector.load %arg7[%c0_6, %c0_7] : memref<16x96xf32, #tpu.memory_space<vmem>>, vector<16x96xf32>
    tpu.vector_store %arg7[%c0_6, %c0_7], %9 {strides = array<i32>} : memref<16x96xf32, #tpu.memory_space<vmem>>, vector<16x96xf32>,
    return
  }
  func.func @transform_0(%arg0: i32, %arg1: i32) -> (i32, i32) {
    %c0_i32 = arith.constant 0 : i32
    %c0_i32_0 = arith.constant 0 : i32
    return %arg0, %c0_i32 : i32, i32
  }
  func.func @transform_1(%arg0: i32, %arg1: i32) -> (i32, i32) {
    %c0_i32 = arith.constant 0 : i32
    %c0_i32_0 = arith.constant 0 : i32
    %c0_i32_1 = arith.constant 0 : i32
    return %c0_i32, %c0_i32_0 : i32, i32
  }
  func.func @transform_2(%arg0: i32, %arg1: i32) -> (i32, i32) {
    %c0_i32 = arith.constant 0 : i32
    %c0_i32_0 = arith.constant 0 : i32
    %c0_i32_1 = arith.constant 0 : i32
    return %c0_i32, %c0_i32_0 : i32, i32
  }
  func.func @transform_3(%arg0: i32, %arg1: i32) -> (i32, i32) {
    %c0_i32 = arith.constant 0 : i32
    %c0_i32_0 = arith.constant 0 : i32
    return %c0_i32, %arg1 : i32, i32
  }
  func.func @transform_4(%arg0: i32, %arg1: i32) -> (i32, i32) {
    %c0_i32 = arith.constant 0 : i32
    %c0_i32_0 = arith.constant 0 : i32
    return %c0_i32, %arg1 : i32, i32
  }
  func.func @transform_5(%arg0: i32, %arg1: i32) -> (i32, i32) {
    %c0_i32 = arith.constant 0 : i32
    return %arg0, %arg1 : i32, i32
  }
}

</mosaic_0001>

<bundles_post_ra>
// kernel: tpu_custom_call.1
= control target key start
LH: loop header
LB: loop body
LE: loop exit
PB: predicated region body
PF: predicated region fallthrough
CT: control target
= control target key end

     0   :  { %10 = vsyncpa [#allocation4], 0  ;;  %s393_s0 = inlined_call_operand.hbm [shape: f32[16,32], index: 0, kind: input, shape index: {}]   ;;  %s394_s1 = inlined_call_operand.hbm [shape: f32[1,32], index: 1, kind: input, shape index: {}]   ;;  %s395_s2 = inlined_call_operand.vmem [shape: f32[1,32], index: 2, kind: input, shape index: {}]   ;;  %s396_s3 = inlined_call_operand.hbm [shape: f32[32,96], index: 3, kind: input, shape index: {}]   ;;  %s397_s4 = inlined_call_operand.vmem [shape: f32[1,96], index: 4, kind: input, shape index: {}]   ;;  %s398_s5 = inlined_call_operand.hbm [shape: f32[16,96], index: 5, kind: output, shape index: {}]  }
   0x1   :  { %11 = vsyncpa [#allocation7], 0  ;;  %s31_s20 = sshll.u32 %s394_s1, 4  ;;  %s32_s20 = int_to_ptr.hbm [resolvable:$true] %s31_s20 }
   0x2   :  { %12 = vsyncpa [#allocation5], 0  ;;  %s324_s21 = smov [#allocation6]   ;;  %s17_s25 = sshll.u32 %s393_s0, 4  ;;  %s18_s25 = int_to_ptr.hbm [resolvable:$true] %s17_s25 }
   0x3   :  { %s33_s22 = sshll.u32 %s324_s21, 4  ;;  %s325_s26 = smov [#allocation3]   ;;  %s34_s22 = int_to_ptr.vmem [resolvable:$true] %s33_s22 }
   0x4   :  { %36 = dma.hbm_to_vmem [thread:$0]  %s32_s20, 16, %s34_s22, [#allocation7]  }
   0x5   :  { %s19_s27 = sshll.u32 %s325_s26, 4  ;;  %s326_s28 = smov 128   ;;  %s20_s27 = int_to_ptr.vmem [resolvable:$true] %s19_s27 }
   0x6   :  { %s327_s29 = smov 8   ;;  %s43_s6 = sshll.u32 %s396_s3, 4  ;;  %s44_s6 = int_to_ptr.hbm [resolvable:$true] %s43_s6 }
   0x7   :  { %25 = dma.hbm_to_vmem [thread:$0]  %s18_s25, 256, %s20_s27, [#allocation4], %s326_s28, %s326_s28, %s327_s29  }
   0x8   :  { %s328_s7 = smov [#allocation8]  }
   0x9   :  { %s45_s8 = sshll.u32 %s328_s7, 4  ;;  %s46_s8 = int_to_ptr.vmem [resolvable:$true] %s45_s8 }
   0xa   :  { %51 = dma.hbm_to_vmem [thread:$0]  %s44_s6, 512, %s46_s8, [#allocation7], %s326_s28, %s326_s28, %s327_s29  }
   0xb   :  { %318 = dma.done.wait [#allocation4], 256  }
   0xc   :  { %319 = vsyncadd [#allocation4], 4294967040 }
   0xd   :  { %320 = dma.done.wait [#allocation7], 528  }
   0xe   :  { %321 = vsyncadd [#allocation7], 4294966768  ;;  %vm75_vm0 = vcmask 261120   ;;  %v71_v0 = vld [vmem:[#allocation3] sm:$0xff]  ;;  %v72_v2 = vld [vmem:[#allocation3 + $0x8] sm:$0xff]  ;;  %v329_v4 = vmov 32.0  }
   0xf   :  { %v76_v1 = vsel %vm75_vm0, %v71_v0, 0.0  ;;  %v79_v3 = vsel %vm75_vm0, %v72_v2, 0.0  ;;  %216 = vrcp.f32 %v329_v4  ;;  %v146_v24 = vld [vmem:[#allocation8 + $0x10] sm:$0xff]  ;;  %v147_v25 = vld [vmem:[#allocation8 + $0x18] sm:$0xff]  ;;  %v144_v27 = vld [vmem:[#allocation8] sm:$0xff]  ;;  %vm139_vm6 = vcmask 257024  }
  0x10   :  { %77 = vadd.xlane.f32.xlu0 %v76_v1  ;;  %v149_v26 = vpack.c.bf16 %v147_v25, %v146_v24  ;;  %v145_v28 = vld [vmem:[#allocation8 + $0x8] sm:$0xff]  ;;  %v213_v41 = vld [vmem:[#allocation6] ss:$0 sm:$0xff]  ;;  %v214_v44 = vld [vmem:[%s395_s2] ss:$0 sm:$0xff]  ;;  %vm177_vm9 = vcmask 785408  }
  0x11   :  { %v148_v31 = vpack.c.bf16 %v145_v28, %v144_v27  ;;  %v215_v58 = vld [vmem:[%s397_s4] ss:$0 sm:$0xff]  ;;  %s330_s10 = smov [#allocation9]   ;;  %s186_s14 = sshll.u32 %s398_s5, 4  ;;  %s187_s14 = int_to_ptr.hbm [resolvable:$true] %s186_s14 }
  0x12   :  { %169 = vmatpush.bf16.msra.mxu0 %v149_v26  ;;  %s184_s11 = sshll.u32 %s330_s10, 4  ;;  %s185_s11 = int_to_ptr.vmem [resolvable:$true] %s184_s11 }
  0x15   :  { %v217_v5 = vpop.eup %216 }
  0x16   :  { %v83_v6 = vmul.f32 32.0, %v217_v5  ;;  %vm87_vm1 = vweird.f32 %v217_v5  ;;  %170 = vmatpush.bf16.msra.mxu0 %v148_v31 }
  0x18   :  { %80 = vadd.xlane.f32.xlu0 %v79_v3  ;;  %v84_v7 = vsub.f32 1.0, %v83_v6 }
  0x1a   :  { %v85_v8 = vmul.f32 %v217_v5, %v84_v7 }
  0x1c   :  { %v86_v9 = vadd.f32 %v217_v5, %v85_v8 }
  0x1e   :  { %v88_v10 = vsel %vm87_vm1, %v217_v5, %v86_v9 }
  0x83   :  { %v78_v11 = vpop.xlane.xlu0 %77 }
  0x84   :  { %v89_v12 = vmul.f32 %v88_v10, %v78_v11 }
  0x86   :  { %v91_v13 = vsub.f32 %v71_v0, %v89_v12 }
  0x88   :  { %v93_v14 = vmul.f32 %v91_v13, %v91_v13 }
  0x8a   :  { %v95_v15 = vsel %vm75_vm0, %v93_v14, 0.0 }
  0x8b   :  { %96 = vadd.xlane.f32.xlu1 %v95_v15  ;;  %v81_v16 = vpop.xlane.xlu0 %80 }
  0x8c   :  { %v90_v17 = vmul.f32 %v88_v10, %v81_v16 }
  0x8e   :  { %v92_v18 = vsub.f32 %v72_v2, %v90_v17 }
  0x90   :  { %v94_v19 = vmul.f32 %v92_v18, %v92_v18 }
  0x92   :  { %v98_v20 = vsel %vm75_vm0, %v94_v19, 0.0 }
  0x93   :  { %99 = vadd.xlane.f32.xlu1 %v98_v20 }
  0xfe   :  { %v97_v21 = vpop.xlane.xlu1 %96 }
  0xff   :  { %v101_v22 = vmul.f32 %v97_v21, %v88_v10 }
 0x101   :  { %v103_v23 = vadd.f32 1e-05, %v101_v22 }
 0x103   :  { %218 = vrsqrt.f32 %v103_v23  ;;  %vm111_vm3 = vweird.f32 %v103_v23 }
 0x106   :  { %v100_v29 = vpop.xlane.xlu1 %99 }
 0x107   :  { %v102_v30 = vmul.f32 %v100_v29, %v88_v10 }
 0x109   :  { %v219_v32 = vpop.eup %218  ;;  %v104_v33 = vadd.f32 1e-05, %v102_v30 }
 0x10a   :  { %v106_v34 = vmul.f32 %v219_v32, %v103_v23  ;;  %vm112_vm2 = vweird.f32 %v219_v32 }
 0x10b   :  { %220 = vrsqrt.f32 %v104_v33  ;;  %vm113_vm4 = vmor %vm111_vm3, %vm112_vm2  ;;  %vm121_vm7 = vweird.f32 %v104_v33 }
 0x10c   :  { %v107_v35 = vmul.f32 %v219_v32, %v106_v34 }
 0x10e   :  { %v108_v36 = vmul.f32 0.5, %v107_v35 }
 0x110   :  { %v109_v37 = vsub.f32 1.5, %v108_v36 }
 0x111   :  { %v221_v38 = vpop.eup %220 }
 0x112   :  { %v110_v39 = vmul.f32 %v219_v32, %v109_v37  ;;  %v116_v40 = vmul.f32 %v221_v38, %v104_v33  ;;  %vm122_vm5 = vweird.f32 %v221_v38 }
 0x113   :  { %vm123_vm8 = vmor %vm121_vm7, %vm122_vm5 }
 0x114   :  { %v114_v42 = vsel %vm113_vm4, %v219_v32, %v110_v39  ;;  %v117_v43 = vmul.f32 %v221_v38, %v116_v40 }
 0x115   :  { %v125_v45 = vmul.f32 %v114_v42, %v91_v13 }
 0x116   :  { %v118_v46 = vmul.f32 0.5, %v117_v43 }
 0x117   :  { %v130_v47 = vmul.f32 %v213_v41, %v125_v45 }
 0x118   :  { %v119_v48 = vsub.f32 1.5, %v118_v46 }
 0x119   :  { %v135_v49 = vadd.f32 %v214_v44, %v130_v47 }
 0x11a   :  { %v120_v50 = vmul.f32 %v221_v38, %v119_v48 }
 0x11b   :  { %v137_v51 = vpack.c.bf16 %v135_v49, %v135_v49 }
 0x11c   :  { %v124_v52 = vsel %vm123_vm8, %v221_v38, %v120_v50 }
 0x11d   :  { %140 = vst.msk [vmem:[#allocation2] sm:$0xf] %vm139_vm6, %v137_v51  ;;  %v126_v53 = vmul.f32 %v124_v52, %v92_v18 }
 0x11f   :  { %v131_v54 = vmul.f32 %v213_v41, %v126_v53 }
 0x121   :  { %v136_v55 = vadd.f32 %v214_v44, %v131_v54 }
 0x123   :  { %v138_v56 = vpack.c.bf16 %v136_v55, %v136_v55 }
 0x125   :  { %141 = vst.msk [vmem:[#allocation2 + $0x4] sm:$0xf] %vm139_vm6, %v138_v56 }
 0x12c   :  { %v205_v57 = vld [vmem:[#allocation2] sm:$0xff] }
 0x12d   :  { %204 = vmatmul.msk.bf16.vlgmr.msra.gmra.mxu0 %vm75_vm0, %v205_v57 }
 0x1aa   :  { %v172_v59 = vpop.f32.mrf.mxu0 }
 0x1ab   :  { %v173_v60 = vadd.f32 %v215_v58, %v172_v59 }
 0x1ad   :  { %178 = vst.msk [vmem:[#allocation9] sm:$0xff] %vm177_vm9, %v173_v60 }
 0x1b2   :  { %v174_v61 = vpop.f32.mrf.mxu0 }
 0x1b3   :  { %v175_v62 = vadd.f32 %v215_v58, %v174_v61 }
 0x1b5   :  { %179 = vst.msk [vmem:[#allocation9 + $0x8] sm:$0xff] %vm177_vm9, %v175_v62 }
 0x1b6   :  { %192 = dma.vmem_to_hbm [thread:$0]  %s185_s11, 256, %s187_s14, [#allocation5], %s326_s28, %s326_s28, %s327_s29  }
 0x1b7   :  { %322 = dma.done.wait [#allocation5], 256  }
 0x1b8   :  { %323 = vsyncadd [#allocation5], 4294967040 }
 0x1b9   :  { %197 = vsyncpa [#allocation4], 1 }
 0x1ba   :  { %198 = vsyncpa [#allocation7], 1 }
 0x1bb   :  { %199 = vsyncpa [#allocation5], 1 }

</bundles_post_ra>
